<compile_context>
chip_gen: v7x
topology: tpu7x:2x2x1
jax: 0.10.0
libtpu: 0.0.40
codegen_flags: <defaults>
</compile_context>

<pallas_src>
import math

import jax
import jax.numpy as jnp
from jax.experimental import pallas as pl
from jax.experimental.pallas import tpu as pltpu

# ----------------------------- model configuration -----------------------------
B = 2                 # demo batch
A_FEAT = 16           # audio_shape[1]
C_FEAT = 8            # clinical_shape[1]
INPUT_DIM = A_FEAT + C_FEAT
H1, H2, H3 = 128, 64, 32
OUTPUT_DIM = 4
OUT_PAD = 128         # lane-dense padded output width (sliced back to OUTPUT_DIM outside)
LEAKY_SLOPE = 0.01    # nn.LeakyReLU() default
TB = 128              # batch tile (multiple of 8); gives >=2 grid steps once bsz > 128

# Set to jnp.bfloat16 on v6e / v7x for half the weight DMA and 2x MXU throughput
# (accumulation stays f32).  Keep f32 on v5e (no native bf16 VPU) and for exact checks.
COMPUTE_DTYPE = jnp.float32


def _leaky_relu(x):
    return jnp.where(x >= 0, x, LEAKY_SLOPE * x)


# ----------------------------- fused kernel -----------------------------
def fused_mlp_kernel(a_ref, c_ref, w1_ref, b1_ref, w2_ref, w3_ref, w4_ref, o_ref):
    cdt = w1_ref.dtype
    # Layer 1: cat(a, c) @ W1 + b1 without the concatenate.
    # Row 16 is sublane-aligned, so these static slices are free views.
    w1a = w1_ref[:A_FEAT, :]
    w1c = w1_ref[A_FEAT:, :]
    h = (jnp.dot(a_ref[...].astype(cdt), w1a, preferred_element_type=jnp.float32)
         + jnp.dot(c_ref[...].astype(cdt), w1c, preferred_element_type=jnp.float32)
         + b1_ref[...].astype(jnp.float32))
    h = _leaky_relu(h)
    # Layer 2 (no bias)
    h = _leaky_relu(jnp.dot(h.astype(cdt), w2_ref[...], preferred_element_type=jnp.float32))
    # Layer 3 (no bias)
    h = _leaky_relu(jnp.dot(h.astype(cdt), w3_ref[...], preferred_element_type=jnp.float32))
    # Output layer (no bias, no activation); lane-dense (TB, 128) store.
    o_ref[...] = jnp.dot(h.astype(cdt), w4_ref[...], preferred_element_type=jnp.float32)


# ----------------------------- wrapper -----------------------------
def early_fusion_forward(params, a, c, *, tb=TB):
    bsz = a.shape[0]
    w1, b1 = params["w1"], params["b1"]
    w2, w3, w4p = params["w2"], params["w3"], params["w4_pad"]

    # Pick the batch tile: full batch if tiny (block == full array is always legal),
    # otherwise TB rows with zero-padding of the trailing partial tile.
    if bsz <= tb:
        tb_eff, padded = bsz, bsz
        a_p, c_p = a, c
    else:
        tb_eff = tb
        padded = pl.cdiv(bsz, tb) * tb
        pad = padded - bsz
        a_p = jnp.pad(a, ((0, pad), (0, 0)))
        c_p = jnp.pad(c, ((0, pad), (0, 0)))

    grid = (padded // tb_eff,)

    flops = 2 * padded * (INPUT_DIM * H1 + H1 * H2 + H2 * H3 + H3 * OUT_PAD)
    bytes_accessed = 4 * (a_p.size + c_p.size + padded * OUT_PAD) + (
        w1.dtype.itemsize * (w1.size + w2.size + w3.size + w4p.size) + 4 * b1.size)

    out_padded = pl.pallas_call(
        fused_mlp_kernel,
        out_shape=jax.ShapeDtypeStruct((padded, OUT_PAD), jnp.float32),
        grid=grid,
        in_specs=[
            pl.BlockSpec((tb_eff, A_FEAT), lambda i: (i, 0)),   # blocked on batch
            pl.BlockSpec((tb_eff, C_FEAT), lambda i: (i, 0)),   # blocked on batch
            pl.BlockSpec(w1.shape, lambda i: (0, 0)),           # weights stay resident
            pl.BlockSpec(b1.shape, lambda i: (0, 0)),
            pl.BlockSpec(w2.shape, lambda i: (0, 0)),
            pl.BlockSpec(w3.shape, lambda i: (0, 0)),
            pl.BlockSpec(w4p.shape, lambda i: (0, 0)),
        ],
        out_specs=pl.BlockSpec((tb_eff, OUT_PAD), lambda i: (i, 0)),
        compiler_params=pltpu.CompilerParams(
            dimension_semantics=("parallel",)),
        cost_estimate=pl.CostEstimate(
            flops=flops, transcendentals=0, bytes_accessed=bytes_accessed),
    )(a_p, c_p, w1, b1, w2, w3, w4p)

    return out_padded[:bsz, :OUTPUT_DIM]


# ----------------------------- parameters -----------------------------
def init_params(key):
    # Weights stored as (fan_in, fan_out) so the kernel computes x @ W.
    # TODO(synk): init is normal/sqrt(fan_in), not torch's Kaiming-uniform; to bit-match
    # a torch checkpoint, load torch weights transposed ((out,in) -> (in,out)).
    k1, k2, k3, k4, kb = jax.random.split(key, 5)

    def dense(k, fan_in, fan_out):
        w = jax.random.normal(k, (fan_in, fan_out), jnp.float32) / math.sqrt(fan_in)
        return w.astype(COMPUTE_DTYPE)

    w4 = dense(k4, H3, OUTPUT_DIM)
    w4_pad = jnp.zeros((H3, OUT_PAD), COMPUTE_DTYPE).at[:, :OUTPUT_DIM].set(w4)

    return {
        "w1": dense(k1, INPUT_DIM, H1),          # first 16 rows multiply a, last 8 multiply c
        "b1": jax.random.uniform(kb, (1, H1), jnp.float32,
                                 -1.0 / math.sqrt(INPUT_DIM), 1.0 / math.sqrt(INPUT_DIM)),
        "w2": dense(k2, H1, H2),                 # bias=False
        "w3": dense(k3, H2, H3),                 # bias=False
        "w4": w4,                                # unpadded (for reference)
        "w4_pad": w4_pad,                        # lane-dense padded copy used by the kernel
    }


# ----------------------------- reference (plain JAX) -----------------------------
def reference_forward(params, a, c):
    x = jnp.concatenate([a, c], axis=1)
    h = _leaky_relu(x @ params["w1"].astype(jnp.float32) + params["b1"])
    h = _leaky_relu(h @ params["w2"].astype(jnp.float32))
    h = _leaky_relu(h @ params["w3"].astype(jnp.float32))
    return h @ params["w4"].astype(jnp.float32)


# ----------------------------- main -----------------------------
if __name__ == "__main__":
    key = jax.random.PRNGKey(0)
    kp, ka, kc, ka2, kc2 = jax.random.split(key, 5)
    params = init_params(kp)

    # Small case (single grid step, blocks == full arrays).
    a = jax.random.normal(ka, (B, A_FEAT), jnp.float32)
    c = jax.random.normal(kc, (B, C_FEAT), jnp.float32)
    out = jax.block_until_ready(early_fusion_forward(params, a, c))
    assert out.shape == (B, OUTPUT_DIM), out.shape
    assert bool(jnp.all(jnp.isfinite(out)))
    ref = reference_forward(params, a, c)
    assert bool(jnp.allclose(out, ref, rtol=1e-5, atol=1e-5)), (out, ref)

    # Larger batch exercises the real batch grid (padding 300 -> 384, grid=(3,)).
    B2 = 300
    a2 = jax.random.normal(ka2, (B2, A_FEAT), jnp.float32)
    c2 = jax.random.normal(kc2, (B2, C_FEAT), jnp.float32)
    out2 = jax.block_until_ready(early_fusion_forward(params, a2, c2))
    ref2 = reference_forward(params, a2, c2)
    assert out2.shape == (B2, OUTPUT_DIM), out2.shape
    assert bool(jnp.allclose(out2, ref2, rtol=1e-4, atol=1e-5))

    print("KERNEL_OK")
</pallas_src>

<mosaic_0001>
module attributes {stable_mosaic.version = 11 : i64} {
  func.func @fused_mlp_kernel(%arg0: i32, %arg1: memref<2x16xf32, #tpu.memory_space<vmem>>, %arg2: memref<2x8xf32, #tpu.memory_space<vmem>>, %arg3: memref<24x128xf32, #tpu.memory_space<vmem>>, %arg4: memref<1x128xf32, #tpu.memory_space<vmem>>, %arg5: memref<128x64xf32, #tpu.memory_space<vmem>>, %arg6: memref<64x32xf32, #tpu.memory_space<vmem>>, %arg7: memref<32x128xf32, #tpu.memory_space<vmem>>, %arg8: memref<2x128xf32, #tpu.memory_space<vmem>>) attributes {dimension_semantics = [#tpu.dimension_semantics<parallel>], iteration_bounds = array<i64: 1>, scalar_prefetch = 0 : i64, scratch_operands = 0 : i64, tpu.core_type = #tpu.core_type<tc>, window_params = [{transform_indices = @transform_0, window_bounds = array<i64: 2, 16>}, {transform_indices = @transform_1, window_bounds = array<i64: 2, 8>}, {pipeline_mode = #tpu.pipeline_mode<synchronous>, transform_indices = @transform_2, window_bounds = array<i64: 24, 128>}, {pipeline_mode = #tpu.pipeline_mode<synchronous>, transform_indices = @transform_3, window_bounds = array<i64: 1, 128>}, {pipeline_mode = #tpu.pipeline_mode<synchronous>, transform_indices = @transform_4, window_bounds = array<i64: 128, 64>}, {pipeline_mode = #tpu.pipeline_mode<synchronous>, transform_indices = @transform_5, window_bounds = array<i64: 64, 32>}, {pipeline_mode = #tpu.pipeline_mode<synchronous>, transform_indices = @transform_6, window_bounds = array<i64: 32, 128>}, {transform_indices = @transform_7, window_bounds = array<i64: 2, 128>}]} {
    %c0 = arith.constant 0 : index
    %c0_0 = arith.constant 0 : index
    %0 = vector.load %arg3[%c0, %c0_0] : memref<24x128xf32, #tpu.memory_space<vmem>>, vector<16x128xf32>
    %c16 = arith.constant 16 : index
    %c0_1 = arith.constant 0 : index
    %1 = vector.load %arg3[%c16, %c0_1] : memref<24x128xf32, #tpu.memory_space<vmem>>, vector<8x128xf32>
    %c0_2 = arith.constant 0 : index
    %c0_3 = arith.constant 0 : index
    %2 = vector.load %arg1[%c0_2, %c0_3] : memref<2x16xf32, #tpu.memory_space<vmem>>, vector<2x16xf32>
    %cst = arith.constant dense<0.000000e+00> : vector<2x128xf32>
    %3 = tpu.matmul %2, %0, %cst {dimension_numbers = #tpu.dot_dimension_numbers<[1], [0], [0], [1], [0, 0, 1, 1], [], []>} : vector<2x16xf32>, vector<16x128xf32>, vector<2x128xf32> -> vector<2x128xf32>
    %c0_4 = arith.constant 0 : index
    %c0_5 = arith.constant 0 : index
    %4 = vector.load %arg2[%c0_4, %c0_5] : memref<2x8xf32, #tpu.memory_space<vmem>>, vector<2x8xf32>
    %cst_6 = arith.constant dense<0.000000e+00> : vector<2x128xf32>
    %5 = tpu.matmul %4, %1, %cst_6 {dimension_numbers = #tpu.dot_dimension_numbers<[1], [0], [0], [1], [0, 0, 1, 1], [], []>} : vector<2x8xf32>, vector<8x128xf32>, vector<2x128xf32> -> vector<2x128xf32>
    %6 = arith.addf %3, %5 : vector<2x128xf32>
    %c0_7 = arith.constant 0 : index
    %c0_8 = arith.constant 0 : index
    %7 = vector.load %arg4[%c0_7, %c0_8] : memref<1x128xf32, #tpu.memory_space<vmem>>, vector<1x128xf32>
    %8 = vector.broadcast %7 : vector<1x128xf32> to vector<2x128xf32>
    %9 = arith.addf %6, %8 : vector<2x128xf32>
    %cst_9 = arith.constant 0.000000e+00 : f32
    %10 = vector.broadcast %cst_9 : f32 to vector<2x128xf32>
    %11 = arith.cmpf oge, %9, %10 : vector<2x128xf32>
    %cst_10 = arith.constant 0.00999999977 : f32
    %12 = vector.broadcast %cst_10 : f32 to vector<2x128xf32>
    %13 = arith.mulf %12, %9 : vector<2x128xf32>
    %14 = arith.select %11, %9, %13 : vector<2x128xi1>, vector<2x128xf32>
    %c0_11 = arith.constant 0 : index
    %c0_12 = arith.constant 0 : index
    %15 = vector.load %arg5[%c0_11, %c0_12] : memref<128x64xf32, #tpu.memory_space<vmem>>, vector<128x64xf32>
    %cst_13 = arith.constant dense<0.000000e+00> : vector<2x64xf32>
    %16 = tpu.matmul %14, %15, %cst_13 {dimension_numbers = #tpu.dot_dimension_numbers<[1], [0], [0], [1], [0, 0, 1, 1], [], []>} : vector<2x128xf32>, vector<128x64xf32>, vector<2x64xf32> -> vector<2x64xf32>
    %cst_14 = arith.constant 0.000000e+00 : f32
    %17 = vector.broadcast %cst_14 : f32 to vector<2x64xf32>
    %18 = arith.cmpf oge, %16, %17 : vector<2x64xf32>
    %cst_15 = arith.constant 0.00999999977 : f32
    %19 = vector.broadcast %cst_15 : f32 to vector<2x64xf32>
    %20 = arith.mulf %19, %16 : vector<2x64xf32>
    %21 = arith.select %18, %16, %20 : vector<2x64xi1>, vector<2x64xf32>
    %c0_16 = arith.constant 0 : index
    %c0_17 = arith.constant 0 : index
    %22 = vector.load %arg6[%c0_16, %c0_17] : memref<64x32xf32, #tpu.memory_space<vmem>>, vector<64x32xf32>
    %cst_18 = arith.constant dense<0.000000e+00> : vector<2x32xf32>
    %23 = tpu.matmul %21, %22, %cst_18 {dimension_numbers = #tpu.dot_dimension_numbers<[1], [0], [0], [1], [0, 0, 1, 1], [], []>} : vector<2x64xf32>, vector<64x32xf32>, vector<2x32xf32> -> vector<2x32xf32>
    %cst_19 = arith.constant 0.000000e+00 : f32
    %24 = vector.broadcast %cst_19 : f32 to vector<2x32xf32>
    %25 = arith.cmpf oge, %23, %24 : vector<2x32xf32>
    %cst_20 = arith.constant 0.00999999977 : f32
    %26 = vector.broadcast %cst_20 : f32 to vector<2x32xf32>
    %27 = arith.mulf %26, %23 : vector<2x32xf32>
    %28 = arith.select %25, %23, %27 : vector<2x32xi1>, vector<2x32xf32>
    %c0_21 = arith.constant 0 : index
    %c0_22 = arith.constant 0 : index
    %29 = vector.load %arg7[%c0_21, %c0_22] : memref<32x128xf32, #tpu.memory_space<vmem>>, vector<32x128xf32>
    %cst_23 = arith.constant dense<0.000000e+00> : vector<2x128xf32>
    %30 = tpu.matmul %28, %29, %cst_23 {dimension_numbers = #tpu.dot_dimension_numbers<[1], [0], [0], [1], [0, 0, 1, 1], [], []>} : vector<2x32xf32>, vector<32x128xf32>, vector<2x128xf32> -> vector<2x128xf32>
    %c0_24 = arith.constant 0 : index
    %c0_25 = arith.constant 0 : index
    %31 = vector.load %arg8[%c0_24, %c0_25] : memref<2x128xf32, #tpu.memory_space<vmem>>, vector<2x128xf32>
    tpu.vector_store %arg8[%c0_24, %c0_25], %30 {strides = array<i32>} : memref<2x128xf32, #tpu.memory_space<vmem>>, vector<2x128xf32>,
    return
  }
  func.func @transform_0(%arg0: i32) -> (i32, i32) {
    %c0_i32 = arith.constant 0 : i32
    %c0_i32_0 = arith.constant 0 : i32
    return %arg0, %c0_i32 : i32, i32
  }
  func.func @transform_1(%arg0: i32) -> (i32, i32) {
    %c0_i32 = arith.constant 0 : i32
    %c0_i32_0 = arith.constant 0 : i32
    return %arg0, %c0_i32 : i32, i32
  }
  func.func @transform_2(%arg0: i32) -> (i32, i32) {
    %c0_i32 = arith.constant 0 : i32
    %c0_i32_0 = arith.constant 0 : i32
    %c0_i32_1 = arith.constant 0 : i32
    return %c0_i32, %c0_i32_0 : i32, i32
  }
  func.func @transform_3(%arg0: i32) -> (i32, i32) {
    %c0_i32 = arith.constant 0 : i32
    %c0_i32_0 = arith.constant 0 : i32
    %c0_i32_1 = arith.constant 0 : i32
    return %c0_i32, %c0_i32_0 : i32, i32
  }
  func.func @transform_4(%arg0: i32) -> (i32, i32) {
    %c0_i32 = arith.constant 0 : i32
    %c0_i32_0 = arith.constant 0 : i32
    %c0_i32_1 = arith.constant 0 : i32
    return %c0_i32, %c0_i32_0 : i32, i32
  }
  func.func @transform_5(%arg0: i32) -> (i32, i32) {
    %c0_i32 = arith.constant 0 : i32
    %c0_i32_0 = arith.constant 0 : i32
    %c0_i32_1 = arith.constant 0 : i32
    return %c0_i32, %c0_i32_0 : i32, i32
  }
  func.func @transform_6(%arg0: i32) -> (i32, i32) {
    %c0_i32 = arith.constant 0 : i32
    %c0_i32_0 = arith.constant 0 : i32
    %c0_i32_1 = arith.constant 0 : i32
    return %c0_i32, %c0_i32_0 : i32, i32
  }
  func.func @transform_7(%arg0: i32) -> (i32, i32) {
    %c0_i32 = arith.constant 0 : i32
    %c0_i32_0 = arith.constant 0 : i32
    return %arg0, %c0_i32 : i32, i32
  }
}

</mosaic_0001>

<bundles_post_ra>
// kernel: tpu_custom_call.1
= control target key start
LH: loop header
LB: loop body
LE: loop exit
PB: predicated region body
PF: predicated region fallthrough
CT: control target
= control target key end

     0   :  { %vm32_vm0 = vcmask 64512   ;;  %v649_v2 = vmov 0.0   ;;  %vm650_vm1 = vmmov 0   ;;  %v651_v6 = vmov 0.0|0.0   ;;  %s833_s0 = inlined_call_operand.vmem [shape: f32[2,16], index: 0, kind: input, shape index: {}]   ;;  %s834_s1 = inlined_call_operand.vmem [shape: f32[2,8], index: 1, kind: input, shape index: {}]   ;;  %s835_s2 = inlined_call_operand.vmem [shape: f32[24,128], index: 2, kind: input, shape index: {}]   ;;  %s836_s3 = inlined_call_operand.vmem [shape: f32[1,128], index: 3, kind: input, shape index: {}]   ;;  %s837_s4 = inlined_call_operand.vmem [shape: f32[128,64], index: 4, kind: input, shape index: {}]   ;;  %s838_s5 = inlined_call_operand.vmem [shape: f32[64,32], index: 5, kind: input, shape index: {}]   ;;  %s839_s6 = inlined_call_operand.vmem [shape: f32[32,128], index: 6, kind: input, shape index: {}]   ;;  %s840_s7 = inlined_call_operand.hbm [shape: f32[2,128], index: 7, kind: output, shape index: {}]  }
   0x1   :  { %v29_v0 = vld [vmem:[%s835_s2 + $0x10] sm:$0xff]  ;;  %v31_v1 = vld [vmem:[%s834_s1] sm:$0x3]  ;;  %499 = vmatprep.subr.mxu1 %v649_v2  ;;  %501 = vmatprep.mubr.msk.f32.mxu1 %vm650_vm1, %v649_v2  ;;  %v28_v4 = vld [vmem:[%s835_s2 + $0x8] sm:$0xff]  ;;  %vm106_vm2 = vcmask 130048  }
   0x2   :  { %v27_v3 = vld [vmem:[%s835_s2] sm:$0xff]  ;;  %500 = vmatpush3.msra.mxu1 %v29_v0  ;;  %579 = vmatprep.subr.bf16.mxu0 %v651_v6  ;;  %v192_v8 = vld [vmem:[%s837_s4 + $0x8] sm:$0xff]  ;;  %v193_v9 = vld [vmem:[%s837_s4 + $0x10] sm:$0xff] }
   0x3   :  { %v577_v5 = vpack.c.bf16 %v28_v4, %v27_v3  ;;  %v191_v7 = vld [vmem:[%s837_s4] sm:$0xff]  ;;  %502 = vmatmul.mubr.msk.f32.vlgmr.msra.gmra.mrb[0].mxu1 %vm32_vm0, %v31_v1  ;;  %576 = vmatprep.subr.bf16.mxu1 %v651_v6  ;;  %v194_v11 = vld [vmem:[%s837_s4 + $0x18] sm:$0xff] }
   0x4   :  { %v580_v10 = vpack.c.bf16 %v192_v8, %v191_v7  ;;  %508 = vmatprep.mubr.msk.f32.mxu1 %vm650_vm1, %v649_v2  ;;  %v30_v12 = vld [vmem:[%s833_s0] sm:$0x3]  ;;  %v583_v13 = vpack.c.bf16 %v194_v11, %v193_v9  ;;  %543 = vmatprep.mubr.msk.f32.mxu0 %vm650_vm1, %v649_v2 }
   0x5   :  { %578 = vmatpush3.bf16.msra.mxu1 %v577_v5 }
   0x6   :  { %581 = vmatpush3.bf16.msra.mxu0 %v580_v10 }
   0x7   :  { %12 = vsyncpa [#allocation3], 0  ;;  %582 = vmatprep.subr.bf16.mxu0 %v651_v6  ;;  %v195_v14 = vld [vmem:[%s837_s4 + $0x20] sm:$0xff]  ;;  %v196_v15 = vld [vmem:[%s837_s4 + $0x28] sm:$0xff]  ;;  %603 = vmatprep.subr.bf16.mxu1 %v651_v6  ;;  %vm288_vm5 = vcmask 523264   ;;  %vm369_vm7 = vcmask 261120  }
   0x8   :  { %509 = vmatmul.mubr.msk.f32.vlgmr.msra.gmra.mrb[2].mxu1 %vm106_vm2, %v30_v12  ;;  %v586_v16 = vpack.c.bf16 %v196_v15, %v195_v14  ;;  %v197_v17 = vld [vmem:[%s837_s4 + $0x30] sm:$0xff]  ;;  %v198_v18 = vld [vmem:[%s837_s4 + $0x38] sm:$0xff]  ;;  %v199_v20 = vld [vmem:[%s837_s4 + $0x40] sm:$0xff]  ;;  %s652_s13 = smov [#allocation2]  }
   0x9   :  { %562 = vmatprep.mubr.msk.f32.mxu1 %vm650_vm1, %v649_v2  ;;  %v589_v19 = vpack.c.bf16 %v198_v18, %v197_v17  ;;  %v200_v21 = vld [vmem:[%s837_s4 + $0x48] sm:$0xff]  ;;  %v201_v23 = vld [vmem:[%s837_s4 + $0x50] sm:$0xff]  ;;  %v202_v24 = vld [vmem:[%s837_s4 + $0x58] sm:$0xff]  ;;  %s450_s2 = sshll.u32 %s652_s13, 4  ;;  %s451_s2 = int_to_ptr.vmem [resolvable:$true] %s450_s2 }
   0xa   :  { %584 = vmatpush3.bf16.msra.mxu0 %v583_v13  ;;  %v592_v22 = vpack.c.bf16 %v200_v21, %v199_v20  ;;  %v595_v25 = vpack.c.bf16 %v202_v24, %v201_v23  ;;  %v203_v26 = vld [vmem:[%s837_s4 + $0x60] sm:$0xff]  ;;  %v204_v27 = vld [vmem:[%s837_s4 + $0x68] sm:$0xff]  ;;  %v205_v29 = vld [vmem:[%s837_s4 + $0x70] sm:$0xff]  ;;  %s625_s14 = scalar_lea.vmem %s451_s2, 32  ;;  %p630_p1 = scmp.lt.s32.totalorder %s451_s2, %s451_s2 }
   0xb   :  { %585 = vmatprep.subr.bf16.mxu0 %v651_v6  ;;  %v598_v28 = vpack.c.bf16 %v204_v27, %v203_v26  ;;  %v206_v30 = vld [vmem:[%s837_s4 + $0x78] sm:$0xff]  ;;  %v280_v32 = vld [vmem:[%s838_s5] sm:$0xff]  ;;  %v281_v33 = vld [vmem:[%s838_s5 + $0x8] sm:$0xff]  ;;  %p626_p0 = scmp.ne.s32.totalorder %s451_s2, %s625_s14  ;;  %p631_p2 = scmp.lt.s32.totalorder %s625_s14, %s625_s14 }
   0xc   :  { %v601_v31 = vpack.c.bf16 %v206_v30, %v205_v29  ;;  %v282_v34 = vld [vmem:[%s838_s5 + $0x10] sm:$0xff]  ;;  %v604_v35 = vpack.c.bf16 %v281_v33, %v280_v32  ;;  %v283_v36 = vld [vmem:[%s838_s5 + $0x18] sm:$0xff]  ;;  %v284_v38 = vld [vmem:[%s838_s5 + $0x20] sm:$0xff] }
   0xd   :  { %v607_v37 = vpack.c.bf16 %v283_v36, %v282_v34  ;;  %v285_v39 = vld [vmem:[%s838_s5 + $0x28] sm:$0xff]  ;;  %v460_v44 = vld [vmem:[%s836_s3] ss:$0 sm:$0xff]  ;;  %v286_v50 = vld [vmem:[%s838_s5 + $0x30] sm:$0xff]  ;;  %p632_p3 = por %p631_p2, %p630_p1 }
   0xe   :  { %587 = vmatpush3.bf16.msra.mxu0 %v586_v16  ;;  %605 = vmatpush3.bf16.msra.mxu1 %v604_v35  ;;  %v610_v40 = vpack.c.bf16 %v285_v39, %v284_v38  ;;  %v287_v51 = vld [vmem:[%s838_s5 + $0x38] sm:$0xff]  ;;  %v365_v53 = vld [vmem:[%s839_s6] sm:$0xff]  ;;  %v366_v54 = vld [vmem:[%s839_s6 + $0x8] sm:$0xff] }
   0xf   :  { %588 = vmatprep.subr.bf16.mxu0 %v651_v6  ;;  %606 = vmatprep.subr.bf16.mxu1 %v651_v6  ;;  %v613_v52 = vpack.c.bf16 %v287_v51, %v286_v50  ;;  %v616_v58 = vpack.c.bf16 %v366_v54, %v365_v53  ;;  %v367_v60 = vld [vmem:[%s839_s6 + $0x10] sm:$0xff]  ;;  %v368_v61 = vld [vmem:[%s839_s6 + $0x18] sm:$0xff]  ;;  %p633_p4 = pnand %p632_p3, %p626_p0 }
  0x10   :  { %v619_v62 = vpack.c.bf16 %v368_v61, %v367_v60 }
  0x12   :  { %590 = vmatpush3.bf16.msra.mxu0 %v589_v19  ;;  %608 = vmatpush3.bf16.msra.mxu1 %v607_v37 }
  0x13   :  { %591 = vmatprep.subr.bf16.mxu0 %v651_v6  ;;  %609 = vmatprep.subr.bf16.mxu1 %v651_v6 }
  0x16   :  { %593 = vmatpush3.bf16.msra.mxu0 %v592_v22  ;;  %611 = vmatpush3.bf16.msra.mxu1 %v610_v40 }
  0x17   :  { %594 = vmatprep.subr.bf16.mxu0 %v651_v6  ;;  %612 = vmatprep.subr.bf16.mxu1 %v651_v6 }
  0x1a   :  { %596 = vmatpush3.bf16.msra.mxu0 %v595_v25  ;;  %614 = vmatpush3.bf16.msra.mxu1 %v613_v52 }
  0x1b   :  { %597 = vmatprep.subr.bf16.mxu0 %v651_v6  ;;  %615 = vmatprep.subr.bf16.mxu1 %v651_v6 }
  0x1e   :  { %599 = vmatpush3.bf16.msra.mxu0 %v598_v28 }
  0x1f   :  { %600 = vmatprep.subr.bf16.mxu0 %v651_v6 }
  0x22   :  { %602 = vmatpush3.bf16.msra.mxu0 %v601_v31 }
  0xd6   :  { %v102_v41 = vpop.f32.mrb[0].mxu1 }
  0xd7   :  { %v503_v42 = vpop.f32.mrb[1].mxu1 }
  0xdb   :  { %v176_v43 = vpop.f32.mrb[2].mxu1 }
  0xdc   :  { %v177_v45 = vadd.f32 %v176_v43, %v102_v41  ;;  %v510_v46 = vpop.f32.mrb[3].mxu1 }
  0xde   :  { %v187_v47 = vadd.f32 %v460_v44, %v177_v45 }
  0xe0   :  { %vm188_vm3 = vcmp.ge.f32.partialorder %v187_v47, 0.0  ;;  %v189_v48 = vmul.f32 0.01, %v187_v47 }
  0xe2   :  { %v190_v49 = vsel %vm188_vm3, %v187_v47, %v189_v48 }
  0xe3   :  { %544 = vmatmul.mubr.f32.vlgmr.msra.gmra.mrb[0].mxu0 %v190_v49 }
 0x1b6   :  { %v273_v55 = vpop.f32.mrb[0].mxu0 }
 0x1b7   :  { %vm277_vm4 = vcmp.ge.f32.partialorder %v273_v55, 0.0  ;;  %v278_v56 = vmul.f32 0.01, %v273_v55  ;;  %v545_v57 = vpop.f32.mrb[1].mxu0 }
 0x1b9   :  { %v279_v59 = vsel %vm277_vm4, %v273_v55, %v278_v56 }
 0x1ba   :  { %563 = vmatmul.mubr.msk.f32.vlgmr.msra.gmra.mrb[4].mxu1 %vm288_vm5, %v279_v59 }
 0x1bb   :  { %617 = vmatpush3.bf16.msra.mxu1 %v616_v58  ;;  %573 = vmatprep.mubr.msk.f32.mxu1 %vm650_vm1, %v649_v2 }
 0x1bc   :  { %618 = vmatprep.subr.bf16.mxu1 %v651_v6 }
 0x1bf   :  { %620 = vmatpush3.bf16.msra.mxu1 %v619_v62 }
 0x28d   :  { %v358_v63 = vpop.f32.mrb[4].mxu1 }
 0x28e   :  { %vm362_vm6 = vcmp.ge.f32.partialorder %v358_v63, 0.0  ;;  %v363_v0 = vmul.f32 0.01, %v358_v63  ;;  %v564_v1 = vpop.f32.mrb[5].mxu1 }
 0x290   :  { %v364_v3 = vsel %vm362_vm6, %v358_v63, %v363_v0 }
 0x291   :  { %574 = vmatmul.mubr.msk.f32.vlgmr.msra.gmra.mrb[6].mxu1 %vm369_vm7, %v364_v3 }
 0x364   :  { %v439_v2 = vpop.f32.mrb[6].mxu1 }
 0x365   :  { %443 = vst [vmem:[#allocation2] sm:$0x3] %v439_v2  ;;  %v575_v4 = vpop.f32.mrb[7].mxu1 }
 0x366   :  { %636 = shalt.err (!%p633_p4)
}
 0x367   :  { %s637_s16 = scalar_lea.hbm %s840_s7, 32 }
 0x368   :  { %p638_p5 = scmp.ne.s32.totalorder %s840_s7, %s637_s16  ;;  %p641_p6 = scmp.lt.u32.totalorder %s637_s16, %s840_s7 }
 0x36a   :  { %p643_p7 = pnand %p641_p6, %p638_p5 }
 0x36c   :  { %646 = shalt.err (!%p643_p7)
}
 0x36d   :  { %453 = dma.vmem_to_hbm [thread:$0]  %s451_s2, 32, %s840_s7, [#allocation3]  }
 0x36e   :  { %647 = dma.done.wait [#allocation3], 32  }
 0x36f   :  { %648 = vsyncadd [#allocation3], 4294967264 }
 0x370   :  { %457 = vsyncpa [#allocation3], 1 }

</bundles_post_ra>
